<compile_context>
chip_gen: v7x
topology: tpu7x:2x2x1
jax: 0.10.0
libtpu: 0.0.40
codegen_flags: <defaults>
</compile_context>

<pallas_src>
import functools
import math

import jax
import jax.numpy as jnp
from jax import lax
from jax.experimental import pallas as pl
from jax.experimental.pallas import tpu as pltpu


_STEP_BYTES_TARGET = 4 << 20   # ~4 MiB of x+out DMA per grid step (HBM-roofline plateau)
_LANE = 128
_SUBLANE = 8


def _round_up(x, m):
    return ((x + m - 1) // m) * m


def _vmem_capacity_bytes():
    """Physical per-core VMEM; conservative fallback is safe on every generation."""
    cap = 64 << 20  # v7x per-TensorCore VMEM (smallest of v5e / v6e / v7x)
    try:
        info = pltpu.get_tpu_info()
        c = getattr(info, "vmem_capacity_bytes", None)
        if c:
            cap = int(c)
    except Exception:
        pass
    return cap


def _feature_resizer_kernel(x_ref, w_ref, b_ref, g_ref, beta_ref, o_ref, *,
                            do_ln, eps, c2_valid):
    # fc: (tm, C1) @ (C1, C2p) + b  -- MXU, f32 accumulation.
    y = jnp.dot(x_ref[...], w_ref[...], preferred_element_type=jnp.float32)
    y = y + b_ref[...].astype(jnp.float32)
    if do_ln:
        c2_pad = y.shape[-1]
        inv_n = 1.0 / c2_valid
        # Padded weight columns / bias are zero, so padded lanes of y are exactly
        # 0 and the lane sum equals the sum over the real C2 features.
        mean = jnp.sum(y, axis=-1, keepdims=True) * inv_n
        yc = y - mean
        if c2_valid != c2_pad:
            lane = lax.broadcasted_iota(jnp.int32, y.shape, 1)
            yc_sq = jnp.where(lane < c2_valid, yc * yc, 0.0)
        else:
            yc_sq = yc * yc
        var = jnp.sum(yc_sq, axis=-1, keepdims=True) * inv_n   # biased, matches torch
        y = yc * lax.rsqrt(var + eps)
        y = y * g_ref[...].astype(jnp.float32) + beta_ref[...].astype(jnp.float32)
    # TODO(synk): nn.Dropout is identity at inference; training-mode stochastic
    # dropout (pltpu.prng_seed / prng_random_bits) intentionally omitted.
    o_ref[...] = y.astype(o_ref.dtype)


@functools.partial(jax.jit, static_argnames=("do_ln", "out_dtype", "tile_m"))
def feature_resizer(x, w, b, gamma, beta, *, do_ln=True, out_dtype=None,
                    tile_m=None):
    """x: (..., C1). w: (C1, C2) = nn.Linear weight pre-transposed.
    b, gamma, beta: (C2,). For a bf16 fast path, pass x / w already in bf16
    (cast at the producer / param init) -- casting here would add an HBM pass."""
    orig_shape = x.shape
    C1 = orig_shape[-1]
    C2 = w.shape[1]
    M = math.prod(orig_shape[:-1]) if len(orig_shape) > 1 else 1
    x2d = x.reshape(M, C1)
    out_dtype = x.dtype if out_dtype is None else out_dtype

    # Lane-dense feature dim: pad C2 to a multiple of 128 so output stores are
    # unmasked; padded lanes carry zeros and are sliced off at the end.
    C2p = _round_up(C2, _LANE)
    if C2p != C2:
        w = jnp.pad(w, ((0, 0), (0, C2p - C2)))
        b = jnp.pad(b, (0, C2p - C2))
        gamma = jnp.pad(gamma, (0, C2p - C2))
        beta = jnp.pad(beta, (0, C2p - C2))

    x_isz = jnp.dtype(x2d.dtype).itemsize
    w_isz = jnp.dtype(w.dtype).itemsize
    o_isz = jnp.dtype(out_dtype).itemsize

    vmem_cap = _vmem_capacity_bytes()
    vmem_budget = (vmem_cap * 7) // 10                       # tile-selection target
    vmem_limit = int(min(vmem_cap, vmem_budget + (8 << 20)))  # explicit scoped limit

    def _footprint(t):
        tiles = 2 * t * C1 * x_isz + 2 * t * C2p * o_isz   # double-buffered x / out tiles
        params = C1 * C2p * w_isz + 3 * C2p * 4            # single-buffered residents
        interm = t * C2p * 4 + t * C1 * 4                  # f32 temporaries headroom
        return tiles + params + interm

    # ---- row-tile selection: byte target, then megacore cap, then VMEM shrink.
    if tile_m is None:
        per_row = C1 * x_isz + C2p * o_isz
        tm = _STEP_BYTES_TARGET // max(per_row, 1)
    else:
        tm = tile_m
    tm = _round_up(max(_SUBLANE, min(int(tm), 4096)), _SUBLANE)
    # v7x: keep >= 2 grid steps so ("parallel",) can shard rows across both
    # TensorCores (near-neutral on v5e/v6e).
    tm = min(tm, max(_SUBLANE, _round_up(-(-M // 2), _SUBLANE)))
    while tm > _SUBLANE and _footprint(tm) > vmem_budget:
        tm = max(_SUBLANE, _round_up(tm // 2, _SUBLANE))

    # Ragged last block handled by Pallas masking -> no pad/slice HBM passes.
    grid = (pl.cdiv(M, tm),)

    # Params kept 2-D so they broadcast along rows inside the kernel.
    b_2d = b.reshape(1, C2p)
    g_2d = gamma.reshape(1, C2p)
    beta_2d = beta.reshape(1, C2p)

    kernel = functools.partial(_feature_resizer_kernel, do_ln=do_ln, eps=1e-12,
                               c2_valid=C2)
    resident = pl.Buffered(1)  # constant index_map -> single buffer, saves VMEM

    out2d = pl.pallas_call(
        kernel,
        out_shape=jax.ShapeDtypeStruct((M, C2p), out_dtype),
        grid_spec=pltpu.PrefetchScalarGridSpec(
            num_scalar_prefetch=0,
            grid=grid,
            in_specs=[
                pl.BlockSpec((tm, C1), lambda i: (i, 0)),                       # x row tile
                pl.BlockSpec((C1, C2p), lambda i: (0, 0), pipeline_mode=resident),  # weight
                pl.BlockSpec((1, C2p), lambda i: (0, 0), pipeline_mode=resident),   # bias
                pl.BlockSpec((1, C2p), lambda i: (0, 0), pipeline_mode=resident),   # LN gamma
                pl.BlockSpec((1, C2p), lambda i: (0, 0), pipeline_mode=resident),   # LN beta
            ],
            out_specs=pl.BlockSpec((tm, C2p), lambda i: (i, 0)),
        ),
        compiler_params=pltpu.CompilerParams(
            dimension_semantics=("parallel",),
            vmem_limit_bytes=vmem_limit),
    )(x2d, w, b_2d, g_2d, beta_2d)

    if C2p != C2:
        out2d = out2d[:, :C2]
    return out2d.reshape(*orig_shape[:-1], C2)


if __name__ == "__main__":
    def reference(x, w, b, gamma, beta, do_ln=True):
        y = x @ w + b
        if do_ln:
            mean = jnp.mean(y, axis=-1, keepdims=True)
            var = jnp.mean((y - mean) ** 2, axis=-1, keepdims=True)
            y = (y - mean) / jnp.sqrt(var + 1e-12) * gamma + beta
        return y  # dropout = identity at inference

    key = jax.random.PRNGKey(0)
    configs = [
        (2, 8, 256, 128),   # lane-dense, divisible M
        (3, 5, 256, 128),   # ragged last row block (M=15)
        (2, 7, 160, 96),    # C2 not a multiple of 128 (lane-pad path) + ragged M
    ]
    for (B, S, C1, C2) in configs:
        key, k_x, k_w, k_b, k_g, k_beta = jax.random.split(key, 6)
        x = jax.random.normal(k_x, (B, S, C1), dtype=jnp.float32)
        lim = 1.0 / (C1 ** 0.5)
        w = jax.random.uniform(k_w, (C1, C2), jnp.float32, -lim, lim)  # (C1, C2)
        b = jax.random.uniform(k_b, (C2,), jnp.float32, -lim, lim)
        gamma = 1.0 + 0.1 * jax.random.normal(k_g, (C2,), jnp.float32)
        beta = 0.1 * jax.random.normal(k_beta, (C2,), jnp.float32)

        out = jax.block_until_ready(feature_resizer(x, w, b, gamma, beta))
        ref = reference(x, w, b, gamma, beta)
        assert out.shape == (B, S, C2), (out.shape, (B, S, C2))
        err = jnp.max(jnp.abs(out - ref))
        assert jnp.allclose(out, ref, atol=1e-4, rtol=1e-4), \
            f"mismatch for config {(B, S, C1, C2)}: max abs err {err}"

    print("KERNEL_OK")
</pallas_src>

<mosaic_0001>
module attributes {stable_mosaic.version = 11 : i64} {
  func.func @_feature_resizer_kernel(%arg0: i32, %arg1: memref<8x256xf32, #tpu.memory_space<vmem>>, %arg2: memref<256x128xf32, #tpu.memory_space<vmem>>, %arg3: memref<1x128xf32, #tpu.memory_space<vmem>>, %arg4: memref<1x128xf32, #tpu.memory_space<vmem>>, %arg5: memref<1x128xf32, #tpu.memory_space<vmem>>, %arg6: memref<8x128xf32, #tpu.memory_space<vmem>>) attributes {dimension_semantics = [#tpu.dimension_semantics<parallel>], iteration_bounds = array<i64: 2>, scalar_prefetch = 0 : i64, scratch_operands = 0 : i64, tpu.core_type = #tpu.core_type<tc>, window_params = [{transform_indices = @transform_0, window_bounds = array<i64: 8, 256>}, {pipeline_mode = #tpu.pipeline_mode<synchronous>, transform_indices = @transform_1, window_bounds = array<i64: 256, 128>}, {pipeline_mode = #tpu.pipeline_mode<synchronous>, transform_indices = @transform_2, window_bounds = array<i64: 1, 128>}, {pipeline_mode = #tpu.pipeline_mode<synchronous>, transform_indices = @transform_3, window_bounds = array<i64: 1, 128>}, {pipeline_mode = #tpu.pipeline_mode<synchronous>, transform_indices = @transform_4, window_bounds = array<i64: 1, 128>}, {transform_indices = @transform_5, window_bounds = array<i64: 8, 128>}]} {
    %c0 = arith.constant 0 : index
    %c0_0 = arith.constant 0 : index
    %0 = vector.load %arg1[%c0, %c0_0] : memref<8x256xf32, #tpu.memory_space<vmem>>, vector<8x256xf32>
    %c0_1 = arith.constant 0 : index
    %c0_2 = arith.constant 0 : index
    %1 = vector.load %arg2[%c0_1, %c0_2] : memref<256x128xf32, #tpu.memory_space<vmem>>, vector<256x128xf32>
    %cst = arith.constant dense<0.000000e+00> : vector<8x128xf32>
    %2 = tpu.matmul %0, %1, %cst {dimension_numbers = #tpu.dot_dimension_numbers<[1], [0], [0], [1], [0, 0, 1, 1], [], []>} : vector<8x256xf32>, vector<256x128xf32>, vector<8x128xf32> -> vector<8x128xf32>
    %c0_3 = arith.constant 0 : index
    %c0_4 = arith.constant 0 : index
    %3 = vector.load %arg3[%c0_3, %c0_4] : memref<1x128xf32, #tpu.memory_space<vmem>>, vector<1x128xf32>
    %4 = vector.broadcast %3 : vector<1x128xf32> to vector<8x128xf32>
    %5 = arith.addf %2, %4 : vector<8x128xf32>
    %cst_5 = arith.constant dense<0.000000e+00> : vector<8xf32>
    %6 = vector.multi_reduction <add>, %5, %cst_5 [1] : vector<8x128xf32> to vector<8xf32>
    %7 = vector.shape_cast %6 : vector<8xf32> to vector<8x1xf32>
    %cst_6 = arith.constant 7.812500e-03 : f32
    %8 = vector.broadcast %cst_6 : f32 to vector<8x1xf32>
    %9 = arith.mulf %7, %8 : vector<8x1xf32>
    %10 = vector.broadcast %9 : vector<8x1xf32> to vector<8x128xf32>
    %11 = arith.subf %5, %10 : vector<8x128xf32>
    %12 = arith.mulf %11, %11 : vector<8x128xf32>
    %cst_7 = arith.constant dense<0.000000e+00> : vector<8xf32>
    %13 = vector.multi_reduction <add>, %12, %cst_7 [1] : vector<8x128xf32> to vector<8xf32>
    %14 = vector.shape_cast %13 : vector<8xf32> to vector<8x1xf32>
    %cst_8 = arith.constant 7.812500e-03 : f32
    %15 = vector.broadcast %cst_8 : f32 to vector<8x1xf32>
    %16 = arith.mulf %14, %15 : vector<8x1xf32>
    %cst_9 = arith.constant 9.99999996E-13 : f32
    %17 = vector.broadcast %cst_9 : f32 to vector<8x1xf32>
    %18 = arith.addf %16, %17 : vector<8x1xf32>
    %19 = math.rsqrt %18 : vector<8x1xf32>
    %20 = vector.broadcast %19 : vector<8x1xf32> to vector<8x128xf32>
    %21 = arith.mulf %11, %20 : vector<8x128xf32>
    %c0_10 = arith.constant 0 : index
    %c0_11 = arith.constant 0 : index
    %22 = vector.load %arg4[%c0_10, %c0_11] : memref<1x128xf32, #tpu.memory_space<vmem>>, vector<1x128xf32>
    %23 = vector.broadcast %22 : vector<1x128xf32> to vector<8x128xf32>
    %24 = arith.mulf %21, %23 : vector<8x128xf32>
    %c0_12 = arith.constant 0 : index
    %c0_13 = arith.constant 0 : index
    %25 = vector.load %arg5[%c0_12, %c0_13] : memref<1x128xf32, #tpu.memory_space<vmem>>, vector<1x128xf32>
    %26 = vector.broadcast %25 : vector<1x128xf32> to vector<8x128xf32>
    %27 = arith.addf %24, %26 : vector<8x128xf32>
    %c0_14 = arith.constant 0 : index
    %c0_15 = arith.constant 0 : index
    %28 = vector.load %arg6[%c0_14, %c0_15] : memref<8x128xf32, #tpu.memory_space<vmem>>, vector<8x128xf32>
    tpu.vector_store %arg6[%c0_14, %c0_15], %27 {strides = array<i32>} : memref<8x128xf32, #tpu.memory_space<vmem>>, vector<8x128xf32>,
    return
  }
  func.func @transform_0(%arg0: i32) -> (i32, i32) {
    %c0_i32 = arith.constant 0 : i32
    %c0_i32_0 = arith.constant 0 : i32
    return %arg0, %c0_i32 : i32, i32
  }
  func.func @transform_1(%arg0: i32) -> (i32, i32) {
    %c0_i32 = arith.constant 0 : i32
    %c0_i32_0 = arith.constant 0 : i32
    %c0_i32_1 = arith.constant 0 : i32
    return %c0_i32, %c0_i32_0 : i32, i32
  }
  func.func @transform_2(%arg0: i32) -> (i32, i32) {
    %c0_i32 = arith.constant 0 : i32
    %c0_i32_0 = arith.constant 0 : i32
    %c0_i32_1 = arith.constant 0 : i32
    return %c0_i32, %c0_i32_0 : i32, i32
  }
  func.func @transform_3(%arg0: i32) -> (i32, i32) {
    %c0_i32 = arith.constant 0 : i32
    %c0_i32_0 = arith.constant 0 : i32
    %c0_i32_1 = arith.constant 0 : i32
    return %c0_i32, %c0_i32_0 : i32, i32
  }
  func.func @transform_4(%arg0: i32) -> (i32, i32) {
    %c0_i32 = arith.constant 0 : i32
    %c0_i32_0 = arith.constant 0 : i32
    %c0_i32_1 = arith.constant 0 : i32
    return %c0_i32, %c0_i32_0 : i32, i32
  }
  func.func @transform_5(%arg0: i32) -> (i32, i32) {
    %c0_i32 = arith.constant 0 : i32
    %c0_i32_0 = arith.constant 0 : i32
    return %arg0, %c0_i32 : i32, i32
  }
}

</mosaic_0001>

<bundles_post_ra>
// kernel: feature_resizer.1
= control target key start
LH: loop header
LB: loop body
LE: loop exit
PB: predicated region body
PF: predicated region fallthrough
CT: control target
= control target key end

     0   :  { %10 = vsyncpa [#allocation3], 0  ;;  %s1011_s0 = inlined_call_operand.hbm [shape: f32[16,256], index: 0, kind: input, shape index: {}]   ;;  %s1012_s1 = inlined_call_operand.hbm [shape: f32[256,128], index: 1, kind: input, shape index: {}]   ;;  %s1013_s2 = inlined_call_operand.vmem [shape: f32[1,128], index: 2, kind: input, shape index: {}]   ;;  %s1014_s3 = inlined_call_operand.vmem [shape: f32[1,128], index: 3, kind: input, shape index: {}]   ;;  %s1015_s4 = inlined_call_operand.vmem [shape: f32[1,128], index: 4, kind: input, shape index: {}]   ;;  %s1016_s5 = inlined_call_operand.hbm [shape: f32[16,128], index: 5, kind: output, shape index: {}]  }
   0x1   :  { %12 = vsyncpa [#allocation3 + $0x1], 0 }
   0x2   :  { %13 = vsyncpa [#allocation6], 0 }
   0x3   :  { %14 = vsyncpa [#allocation4], 0 }
   0x4   :  { %16 = vsyncpa [#allocation4 + $0x1], 0  ;;  %s801_s18 = smov 0   ;;  %s803_s19 = smov 0  }
   0x5   :  { %s805_s20 = smov 0   ;;  %s807_s21 = smov 0  }
   0x6 LB: > { %s822_s22 = sadd.s32 4294967295, %s764_s21   ;;  %s489_s23 = sadd.s32 4294967294, %s764_s21   ;;  %s764_s21 = sphi %s807_s21, %s1036_s21   ;;  %s760_s20 = sphi %s805_s20, %s1035_s20   ;;  %s756_s19 = sphi %s803_s19, %s1034_s19   ;;  %s752_s18 = sphi %s801_s18, %s1033_s18  }
   0x7   : > { %p42_p0 = scmp.ne.s32.totalorder %s756_s19, %s752_s18  ;;  %p1017_p1 = scmp.eq.s32.totalorder %s822_s22, 0 }
   0x8   : > { %p156_p3 = scmp.eq.s32.totalorder %s489_s23, 1  ;;  %p490_p5 = scmp.ge.s32.totalorder %s764_s21, 1 }
   0x9   : > { %p831_p4 = por %p1017_p1, %p42_p0  ;;  %p163_p7 = scmp.lt.s32.totalorder %s764_s21, 3 }
   0xa   : > { %p836_p6 = por %p156_p3, %p42_p0  ;;  %s766_s27 = smov [#allocation5]  }
   0xb   : > { %s1020_s24 = scalar_select %p831_p4, 1, 0 }
   0xc   : > { %s1021_s25 = scalar_select %p836_p6, 1, 0 }
   0xd   : > { %p841_p8 = pnand %p490_p5, %p163_p7  ;;  %s175_s28 = sshll.u32 %s766_s27, 4  ;;  %s845_s28 = int_to_ptr.vmem [resolvable:$true] %s175_s28 }
   0xe   : > { %s857_s30 = sadd.s32 1, %s764_s21   ;;  %s29_s6 = sadd.s32 1, %s760_s20 }
   0xf   : > { %s1022_s26 = scalar_select %p841_p8, 1, 0 }
  0x10   : > { %p583_p9 = pneg %p841_p8  ;;  %s26_s7 = ssub.s32 %s764_s21, %s857_s30 }
  0x11   : > { %s636_s10 = scalar_lea.hbm %s1012_s1, 4096 }
  0x12   : > { %p852_p11 = pnand %p583_p9, %p1017_p1  ;;  %p637_p12 = scmp.ne.s32.totalorder %s1012_s1, %s636_s10 }
  0x13   : > { %p643_p5 = scmp.lt.u32.totalorder %s636_s10, %s1012_s1 }
  0x14   : > { %p638_p13 = pneg %p852_p11 }
  0x16   : > { %p639_p0 = pnand %p638_p13, %p637_p12 }
  0x18   : > { %p640_p3 = pneg %p639_p0 }
  0x1a   : > { %p645_p7 = pnand %p643_p5, %p640_p3 }
  0x1c   : > { %648 = shalt.err (!%p645_p7)
}
  0x1d   : > { %s649_s15 = scalar_lea.vmem %s845_s28, 4096  ;;  %p657_p2 = scmp.lt.s32.totalorder %s845_s28, %s845_s28 }
  0x1e   : > { %p650_p9 = scmp.ne.s32.totalorder %s845_s28, %s649_s15  ;;  %p658_p6 = scmp.lt.s32.totalorder %s649_s15, %s649_s15 }
  0x20   : > { %p652_p10 = pnand %p650_p9, %p638_p13  ;;  %p659_p4 = por %p658_p6, %p657_p2 }
  0x22   : > { %p653_p1 = pneg %p652_p10 }
  0x24   : > { %p660_p8 = pnand %p659_p4, %p653_p1 }
  0x26   : > { %663 = shalt.err (!%p660_p8)
}
  0x27   : > { %s767_s16 = smov 128   ;;  %s768_s17 = smov 8  }
  0x28   : > { %586 = dma.hbm_to_vmem [thread:$0]  (!%p852_p11), %s1012_s1, 4096, %s845_s28, [#allocation6], %s767_s16, %s767_s16, %s768_s17  }
  0x29   : > { %p27_p2 = scmp.eq.s32.totalorder %s26_s7, 0  ;;  %p36_p1 = scmp.ne.s32.totalorder %s760_s20, %s756_s19 }
  0x2a   : > { %p37_p4 = scmp.eq.s32.totalorder %s764_s21, 0  ;;  %p596_p6 = scmp.lt.s32.totalorder %s764_s21, 2 }
  0x2b   : > { %s888_s8 = scalar_select %p27_p2, %s760_s20, %s29_s6  }
  0x2c   : > { %p38_p8 = por %p37_p4, %p36_p1  ;;  %p1024_p10 = scmp.eq.s32.totalorder %s822_s22, 1 }
  0x2d   : > { %s198_s10 = sand.u32 1, %s760_s20   ;;  %s507_s11 = sshll.u32 %s764_s21, 8 }
  0x2e   : > { %p892_p12 = por %p1024_p10, %p36_p1  ;;  %s493_s12 = sshll.u32 %s198_s10, 4 }
  0x2f   : > { %s901_s14 = scalar_lea.hbm %s1011_s0, %s507_s11  ;;  %s202_s28 = scalar_lea.vmem [#allocation2], %s493_s12 }
  0x30   : > { %s210_s6 = sshll.u32 %s202_s28, 4  ;;  %p903_p11 = pnand %p596_p6, %p38_p8  ;;  %s907_s6 = int_to_ptr.vmem [resolvable:$true] %s210_s6 }
  0x31   : > { %s199_s15 = scalar_lea.sflag [#allocation3], %s198_s10  ;;  %s664_s16 = scalar_lea.hbm %s901_s14, 256 }
  0x32   : > { %p665_p13 = scmp.ne.s32.totalorder %s901_s14, %s664_s16  ;;  %p666_p0 = pneg %p903_p11 }
  0x33   : > { %s669_s27 = scalar_lea.hbm %s1011_s0, 512  ;;  %p670_p7 = scmp.lt.u32.totalorder %s901_s14, %s1011_s0 }
  0x34   : > { %p667_p3 = pnand %p666_p0, %p665_p13  ;;  %p671_p9 = scmp.lt.u32.totalorder %s669_s27, %s664_s16 }
  0x35   : > { %p673_p1 = scmp.lt.u32.totalorder %s664_s16, %s901_s14 }
  0x36   : > { %p668_p5 = pneg %p667_p3  ;;  %p672_p2 = por %p671_p9, %p670_p7 }
  0x38   : > { %p674_p4 = por %p673_p1, %p672_p2 }
  0x3a   : > { %p675_p6 = pnand %p674_p4, %p668_p5 }
  0x3c   : > { %678 = shalt.err (!%p675_p6)
}
  0x3d   : > { %s679_s10 = scalar_lea.vmem %s907_s6, 256  ;;  %s769_s29 = smov [#allocation2]  }
  0x3e   : > { %p680_p8 = scmp.ne.s32.totalorder %s907_s6, %s679_s10  ;;  %s684_s13 = sshll.u32 %s769_s29, 4  ;;  %s685_s13 = int_to_ptr.vmem [resolvable:$false] %s684_s13 }
  0x3f   : > { %s686_s28 = scalar_lea.vmem %s685_s13, 512  ;;  %p687_p3 = scmp.lt.s32.totalorder %s907_s6, %s685_s13 }
  0x40   : > { %p682_p10 = pnand %p680_p8, %p666_p0  ;;  %p688_p7 = scmp.lt.s32.totalorder %s686_s28, %s679_s10 }
  0x42   : > { %p683_p13 = pneg %p682_p10  ;;  %p689_p9 = por %p688_p7, %p687_p3 }
  0x44   : > { %p690_p2 = pnand %p689_p9, %p683_p13 }
  0x46   : > { %693 = shalt.err (!%p690_p2)
}
  0x47   : > { %590 = dma.hbm_to_vmem [thread:$0]  (!%p903_p11), %s901_s14, 256, %s907_s6, %s199_s15  }
  0x48   : > { %p1027_p5 = scmp.ne.s32.totalorder %s1022_s26, 0 }
  0x49   : > { %s937_s16 = sand.u32 (!%p1027_p5), 1, %s756_s19   ;;  %p1028_p0 = scmp.ne.s32.totalorder (!%p1027_p5), %s1020_s24, 0 }
  0x4a   : > { %219 = sbr.rel (%p1027_p5) target bundleno = 662 (0x296), region = 40  ;;  %s497_s17 = sshll.u32 (!%p1027_p5), %s937_s16, 4 }
  0x4b   : > { %s222_s23 = scalar_lea.sflag (!%p1027_p5), [#allocation3], %s937_s16  ;;  %s941_s27 = scalar_lea.vmem (!%p1027_p5), [#allocation2], %s497_s17 }
  0x51   : > { %739 = dma.done.wait (%p1028_p0), %s222_s23, 256  }
  0x52   : > { %741 = vsyncadd (%p1028_p0), %s222_s23, 4294967040  ;;  %p1029_p11 = scmp.eq.s32.totalorder %s822_s22, 0 }
  0x54   : > { %743 = dma.done.wait (%p1029_p11), [#allocation6], 4096   ;;  %p1030_p1 = pmov %p1029_p11 }
  0x55   : > { %v274_v0 = vld [vmem:[#allocation5 + $0x80] sm:$0xff]  ;;  %v275_v1 = vld [vmem:[#allocation5 + $0x88] sm:$0xff]  ;;  %v276_v5 = vld [vmem:[#allocation5 + $0x90] sm:$0xff]  ;;  %s499_s14 = sshll.u32 %s937_s16, 3  ;;  %s504_s12 = sshll.u32 %s822_s22, 7 }
  0x56   : > { %745 = vsyncadd (%p1030_p1), [#allocation6], 4294963200  ;;  %v258_v2 = vld [vmem:[#allocation5] sm:$0xff]  ;;  %v543_v3 = vpack.c.bf16 %v275_v1, %v274_v0  ;;  %v259_v4 = vld [vmem:[#allocation5 + $0x8] sm:$0xff]  ;;  %s255_s10 = scalar_lea.vmem [#allocation7], %s499_s14  ;;  %s967_s17 = scalar_lea.hbm %s1016_s5, %s504_s12 }
  0x57   : > { %v277_v6 = vld [vmem:[#allocation5 + $0x98] sm:$0xff]  ;;  %v545_v7 = vpack.c.bf16 %v259_v4, %v258_v2  ;;  %v260_v9 = vld [vmem:[#allocation5 + $0x10] sm:$0xff]  ;;  %v278_v11 = vld [vmem:[#allocation5 + $0xa0] sm:$0xff]  ;;  %s409_s29 = sshll.u32 %s255_s10, 4  ;;  %s396_s23 = scalar_lea.sflag [#allocation4], %s937_s16  ;;  %s969_s29 = int_to_ptr.vmem [resolvable:$true] %s409_s29 }
  0x58   : > { %v547_v8 = vpack.c.bf16 %v277_v6, %v276_v5  ;;  %v261_v10 = vld [vmem:[#allocation5 + $0x18] sm:$0xff]  ;;  %544 = vmatprep.subr.bf16.mxu0 %v543_v3  ;;  %v279_v12 = vld [vmem:[#allocation5 + $0xa8] sm:$0xff]  ;;  %v262_v15 = vld [vmem:[#allocation5 + $0x20] sm:$0xff]  ;;  %s770_s22 = smov [#allocation7]  }
  0x59   : > { %546 = vmatpush3.bf16.msra.mxu0 %v545_v7  ;;  %v549_v13 = vpack.c.bf16 %v261_v10, %v260_v9  ;;  %v551_v14 = vpack.c.bf16 %v279_v12, %v278_v11  ;;  %v263_v16 = vld [vmem:[#allocation5 + $0x28] sm:$0xff]  ;;  %v280_v17 = vld [vmem:[#allocation5 + $0xb0] sm:$0xff]  ;;  %v281_v18 = vld [vmem:[#allocation5 + $0xb8] sm:$0xff]  ;;  %s698_s24 = sshll.u32 %s770_s22, 4  ;;  %s699_s24 = int_to_ptr.vmem [resolvable:$false] %s698_s24 }
  0x5a   : > { %548 = vmatprep.subr.bf16.mxu0 %v547_v8  ;;  %v553_v19 = vpack.c.bf16 %v263_v16, %v262_v15  ;;  %v555_v20 = vpack.c.bf16 %v281_v18, %v280_v17  ;;  %v264_v21 = vld [vmem:[#allocation5 + $0x30] sm:$0xff]  ;;  %v265_v22 = vld [vmem:[#allocation5 + $0x38] sm:$0xff]  ;;  %v282_v23 = vld [vmem:[#allocation5 + $0xc0] sm:$0xff]  ;;  %s700_s26 = scalar_lea.vmem %s699_s24, 256  ;;  %p701_p10 = scmp.lt.s32.totalorder %s969_s29, %s699_s24 }
  0x5b   : > { %v283_v24 = vld [vmem:[#allocation5 + $0xc8] sm:$0xff]  ;;  %v557_v26 = vpack.c.bf16 %v265_v22, %v264_v21  ;;  %v266_v28 = vld [vmem:[#allocation5 + $0x40] sm:$0xff]  ;;  %v284_v30 = vld [vmem:[#allocation5 + $0xd0] sm:$0xff] }
  0x5c   : > { %v257_v25 = vld [vmem:[%s941_s27 + $0x8] sm:$0xff]  ;;  %v559_v27 = vpack.c.bf16 %v283_v24, %v282_v23  ;;  %v268_v34 = vld [vmem:[#allocation5 + $0x50] sm:$0xff]  ;;  %v286_v36 = vld [vmem:[#allocation5 + $0xe0] sm:$0xff] }
  0x5d   : > { %550 = vmatpush3.bf16.msra.mxu0 %v549_v13  ;;  %361 = vmatprep.mubr.f32.mxu0 %v257_v25  ;;  %v267_v29 = vld [vmem:[#allocation5 + $0x48] sm:$0xff]  ;;  %v285_v31 = vld [vmem:[#allocation5 + $0xd8] sm:$0xff]  ;;  %v270_v40 = vld [vmem:[#allocation5 + $0x60] sm:$0xff] }
  0x5e   : > { %552 = vmatprep.subr.bf16.mxu0 %v551_v14  ;;  %v561_v32 = vpack.c.bf16 %v267_v29, %v266_v28  ;;  %v563_v33 = vpack.c.bf16 %v285_v31, %v284_v30  ;;  %v269_v35 = vld [vmem:[#allocation5 + $0x58] sm:$0xff]  ;;  %v287_v37 = vld [vmem:[#allocation5 + $0xe8] sm:$0xff]  ;;  %v288_v42 = vld [vmem:[#allocation5 + $0xf0] sm:$0xff] }
  0x5f   : > { %v565_v38 = vpack.c.bf16 %v269_v35, %v268_v34  ;;  %v567_v39 = vpack.c.bf16 %v287_v37, %v286_v36  ;;  %v271_v41 = vld [vmem:[#allocation5 + $0x68] sm:$0xff]  ;;  %v289_v43 = vld [vmem:[#allocation5 + $0xf8] sm:$0xff]  ;;  %v272_v46 = vld [vmem:[#allocation5 + $0x70] sm:$0xff] }
  0x60   : > { %v569_v44 = vpack.c.bf16 %v271_v41, %v270_v40  ;;  %v571_v45 = vpack.c.bf16 %v289_v43, %v288_v42  ;;  %v273_v47 = vld [vmem:[#allocation5 + $0x78] sm:$0xff]  ;;  %v256_v49 = vld [vmem:[%s941_s27] sm:$0xff]  ;;  %s694_s27 = scalar_lea.vmem %s969_s29, 128 }
  0x61   : > { %554 = vmatpush3.bf16.msra.mxu0 %v553_v19  ;;  %v573_v48 = vpack.c.bf16 %v273_v47, %v272_v46  ;;  %v500_v52 = vld [vmem:[%s1013_s2] ss:$0 sm:$0xff]  ;;  %p695_p4 = scmp.ne.s32.totalorder %s969_s29, %s694_s27  ;;  %p702_p13 = scmp.lt.s32.totalorder %s700_s26, %s694_s27 }
  0x62   : > { %556 = vmatprep.subr.bf16.mxu0 %v555_v20  ;;  %v501_v63 = vld [vmem:[%s1014_s3] ss:$0 sm:$0xff] }
  0x63   : > { %v502_v1 = vld [vmem:[%s1015_s4] ss:$0 sm:$0xff]  ;;  %p696_p6 = pnand %p695_p4, %p892_p12  ;;  %p703_p3 = por %p702_p13, %p701_p10 }
  0x65   : > { %558 = vmatpush3.bf16.msra.mxu0 %v557_v26  ;;  %p697_p8 = pneg %p696_p6 }
  0x66   : > { %560 = vmatprep.subr.bf16.mxu0 %v559_v27 }
  0x67   : > { %p704_p7 = pnand %p703_p3, %p697_p8 }
  0x69   : > { %562 = vmatpush3.bf16.msra.mxu0 %v561_v32 }
  0x6a   : > { %564 = vmatprep.subr.bf16.mxu0 %v563_v33 }
  0x6d   : > { %566 = vmatpush3.bf16.msra.mxu0 %v565_v38 }
  0x6e   : > { %568 = vmatprep.subr.bf16.mxu0 %v567_v39 }
  0x71   : > { %570 = vmatpush3.bf16.msra.mxu0 %v569_v44 }
  0x72   : > { %572 = vmatprep.subr.bf16.mxu0 %v571_v45 }
  0x75   : > { %574 = vmatpush3.bf16.msra.mxu0 %v573_v48 }
  0x78   : > { %362 = vmatmul.mubr.f32.vlgmr.msra.gmra.mrb[0].mxu0 %v256_v49 }
 0x14b   : > { %v540_v50 = vpop.f32.mrb[0].mxu0 }
 0x14c   : > { %v541_v51 = vpop.f32.mrb[1].mxu0 }
 0x14d   : > { %v542_v53 = vadd.f32 %v541_v51, %v540_v50 }
 0x14f   : > { %v364_v54 = vadd.f32 %v542_v53, %v500_v52 }
 0x151   : > { %367 = vadd.xlane.f32.xlu0 %v364_v54 }
 0x1de   : > { %v368_v55 = vpop.xlane.xlu0 %367 }
 0x1df   : > { %v369_v56 = vmul.f32 0.0078125, %v368_v55 }
 0x1e1   : > { %v370_v57 = vsub.f32 %v364_v54, %v369_v56 }
 0x1e3   : > { %v371_v58 = vmul.f32 %v370_v57, %v370_v57 }
 0x1e5   : > { %372 = vadd.xlane.f32.xlu0 %v371_v58 }
 0x272   : > { %v373_v59 = vpop.xlane.xlu0 %372 }
 0x273   : > { %v374_v60 = vmul.f32 0.0078125, %v373_v59 }
 0x275   : > { %v375_v61 = vadd.f32 1e-12, %v374_v60 }
 0x277   : > { %634 = vrsqrt.f32 %v375_v61 }
 0x281   : > { %v635_v62 = vpop.eup %634 }
 0x282   : > { %v377_v0 = vmul.f32 %v635_v62, %v370_v57 }
 0x284   : > { %v385_v2 = vmul.f32 %v501_v63, %v377_v0 }
 0x286   : > { %v393_v3 = vadd.f32 %v502_v1, %v385_v2 }
 0x288   : > { %394 = vst [vmem:[%s255_s10] sm:$0xff] %v393_v3 }
 0x289   : > { %707 = shalt.err (!%p704_p7)
}
 0x28a   : > { %s708_s16 = scalar_lea.hbm %s967_s17, 128  ;;  %s712_s7 = scalar_lea.hbm %s1016_s5, 256 }
 0x28b   : > { %p709_p9 = scmp.ne.s32.totalorder %s967_s17, %s708_s16  ;;  %p713_p0 = scmp.lt.u32.totalorder %s967_s17, %s1016_s5 }
 0x28c   : > { %p714_p11 = scmp.lt.u32.totalorder %s712_s7, %s708_s16  ;;  %p716_p4 = scmp.lt.u32.totalorder %s708_s16, %s967_s17 }
 0x28d   : > { %p710_p2 = pnand %p709_p9, %p892_p12 }
 0x28e   : > { %p715_p1 = por %p714_p11, %p713_p0 }
 0x28f   : > { %p711_p5 = pneg %p710_p2 }
 0x290   : > { %p717_p6 = por %p716_p4, %p715_p1 }
 0x292   : > { %p718_p8 = pnand %p717_p6, %p711_p5 }
 0x294   : > { %721 = shalt.err (!%p718_p8)
}
 0x295   : > { %581 = dma.vmem_to_hbm [thread:$0]  (%p892_p12), %s969_s29, 128, %s967_s17, %s396_s23  }
 0x296 PF: > { %s421_s12 = sand.u32 1, %s752_s18   ;;  %p1031_p10 = scmp.ne.s32.totalorder %s1021_s25, 0 }
 0x297   : > { %p1032_p13 = scmp.ge.s32.totalorder %s764_s21, 2  ;;  %s422_s10 = scalar_lea.sflag [#allocation4], %s421_s12 }
 0x299   : > { %p592_p3 = pnand %p1032_p13, %p1031_p10 }
 0x29b   : > { %747 = dma.done.wait (!%p592_p3), %s422_s10, 128  }
 0x29c   : > { %749 = vsyncadd (!%p592_p3), %s422_s10, 4294967168  ;;  %p19_p7 = scmp.ge.s32.totalorder %s857_s30, 4   ;;  %s1033_s18 = smov %s756_s19 }
 0x29d   : > { %s1034_s19 = smov %s760_s20  ;;  %s1035_s20 = smov %s888_s8 }
 0x29e   : > { %s1036_s21 = smov %s857_s30  ;;  %21 = sbr.rel (!%p19_p7) target bundleno = 6 (0x6), region = 89 }
 0x2a5   :  { %427 = vsyncpa [#allocation3], 1 }
 0x2a6   :  { %429 = vsyncpa [#allocation3 + $0x1], 1 }
 0x2a7   :  { %430 = vsyncpa [#allocation6], 1 }
 0x2a8   :  { %431 = vsyncpa [#allocation4], 1 }
 0x2a9   :  { %433 = vsyncpa [#allocation4 + $0x1], 1 }

</bundles_post_ra>
